<compile_context>
chip_gen: v6e
topology: v6e:2x2x1
jax: 0.10.0
libtpu: 0.0.40
codegen_flags: <defaults>
</compile_context>

<pallas_src>
import functools
import math

import jax
import jax.numpy as jnp
from jax.experimental import pallas as pl
from jax.experimental.pallas import tpu as pltpu


# --------------------------------------------------------------------------- #
# Kernel 1: row-tiled Linear projection  xw = x @ W                            #
# --------------------------------------------------------------------------- #
def linear_kernel(x_ref, w_ref, out_ref):
    out_ref[...] = jnp.dot(x_ref[...], w_ref[...],
                           preferred_element_type=jnp.float32
                           ).astype(out_ref.dtype)


def linear_project(x, w, *, tile_m=512):
    """x: (N, F_in) fp32, w: (F_in, F_out) fp32 -> (N, F_out) fp32."""
    N, fin = x.shape
    fout = w.shape[1]
    tm = min(tile_m, N)
    assert N % tm == 0, "N must be divisible by the row tile size"

    cost = pl.CostEstimate(
        flops=2 * N * fin * fout,
        transcendentals=0,
        bytes_accessed=4 * (N * fin + fin * fout + N * fout),
    )

    return pl.pallas_call(
        linear_kernel,
        out_shape=jax.ShapeDtypeStruct((N, fout), jnp.float32),
        grid_spec=pltpu.PrefetchScalarGridSpec(
            num_scalar_prefetch=0,
            grid=(N // tm,),
            in_specs=[
                pl.BlockSpec((tm, fin), lambda i: (i, 0)),
                pl.BlockSpec((fin, fout), lambda i: (0, 0)),
            ],
            out_specs=pl.BlockSpec((tm, fout), lambda i: (i, 0)),
        ),
        compiler_params=pltpu.CompilerParams(
            dimension_semantics=("parallel",),
        ),
        cost_estimate=cost,
    )(x, w)


# --------------------------------------------------------------------------- #
# Kernel 2: GIN aggregation  out = act((1+eps)*xw + adj @ xw + b)               #
# --------------------------------------------------------------------------- #
def gin_agg_kernel(adj_ref, xwi_ref, xwj_ref, b_ref, out_ref, acc_ref,
                   *, eps, apply_relu):
    """Grid: (i over row blocks, j over adj column blocks); j is the reduction
    axis (last).  acc_ref is a persistent (tile_i, F_out) fp32 scratch."""
    j = pl.program_id(1)

    # Init the accumulator with the (1 + eps) * (x @ W) self term.
    @pl.when(j == 0)
    def _init():
        acc_ref[...] = (1.0 + eps) * xwi_ref[...]

    # Accumulate one column block of adj @ (x @ W) on the MXU (fp32 accumulate;
    # adj arrives as bf16 from HBM and is upcast in VMEM).
    acc_ref[...] += jnp.dot(adj_ref[...].astype(jnp.float32), xwj_ref[...],
                            preferred_element_type=jnp.float32)

    # Last reduction step: bias (+ optional ReLU) and store the output tile.
    @pl.when(j == pl.num_programs(1) - 1)
    def _finalize():
        z = acc_ref[...] + b_ref[...]
        if apply_relu:
            z = jnp.maximum(z, 0.0)
        out_ref[...] = z.astype(out_ref.dtype)


def gin_conv(adj, x, w, b, *, eps=0.0, apply_relu=False,
             tile_i=512, tile_j=512):
    """One GINConv(Linear) layer.

    adj: (N, N) (bf16 recommended, 0/1 values exact), x: (N, F_in) fp32,
    w: (F_in, F_out) fp32, b: (F_out,) fp32 -> (N, F_out) fp32.
    """
    N = adj.shape[0]
    fout = w.shape[1]

    ti = min(tile_i, N)
    tj = min(tile_j, N)
    assert N % ti == 0 and N % tj == 0, "N must be divisible by the tile sizes"
    grid = (N // ti, N // tj)

    # Reassociated Linear: project first, aggregate the projected features.
    xw = linear_project(x, w, tile_m=ti)

    kernel = functools.partial(gin_agg_kernel, eps=float(eps),
                               apply_relu=apply_relu)

    adj_bytes = jnp.dtype(adj.dtype).itemsize
    # Actual multi-buffered VMEM footprint of the aggregation kernel.
    vmem_bytes = (
        3 * ti * tj * adj_bytes      # adj tiles (triple-buffered)
        + 2 * ti * fout * 4          # xw self-term tiles
        + 2 * tj * fout * 4          # xw neighbor tiles
        + 2 * ti * fout * 4          # output tiles
        + ti * fout * 4              # fp32 accumulator scratch
        + 2 * fout * 4               # bias
    )
    vmem_limit = min(int(vmem_bytes * 1.5) + (2 << 20), 64 << 20)

    cost = pl.CostEstimate(
        flops=2 * N * N * fout + 2 * N * fout,
        transcendentals=0,
        bytes_accessed=(N * N * adj_bytes                    # adj stream
                        + (N // ti) * N * fout * 4           # xw col-block re-reads
                        + N * fout * 4                       # xw self-term reads
                        + N * fout * 4                       # output writes
                        + fout * 4),
    )

    return pl.pallas_call(
        kernel,
        out_shape=jax.ShapeDtypeStruct((N, fout), jnp.float32),
        grid_spec=pltpu.PrefetchScalarGridSpec(
            num_scalar_prefetch=0,
            grid=grid,
            in_specs=[
                # adj tile: dominant HBM stream, triple-buffered.
                pl.BlockSpec((ti, tj), lambda i, j: (i, j),
                             pipeline_mode=pl.Buffered(3)),
                pl.BlockSpec((ti, fout), lambda i, j: (i, 0)),   # xw (self term)
                pl.BlockSpec((tj, fout), lambda i, j: (j, 0)),   # xw (neighbors)
                pl.BlockSpec((1, fout), lambda i, j: (0, 0)),    # bias
            ],
            out_specs=pl.BlockSpec((ti, fout), lambda i, j: (i, 0)),
            scratch_shapes=[pltpu.VMEM((ti, fout), jnp.float32)],
        ),
        compiler_params=pltpu.CompilerParams(
            dimension_semantics=("parallel", "arbitrary"),
            vmem_limit_bytes=vmem_limit,
        ),
        cost_estimate=cost,
    )(adj, xw, xw, b.reshape(1, fout))


def gin_forward(feats, adj, w1, b1, w2, b2, eps1=0.0, eps2=0.0,
                tile_i=512, tile_j=512):
    """Full GIN forward: conv1 -> ReLU -> conv2."""
    # Cast the adjacency once (bf16 is exact for 0/1 graphs); both layers reuse it.
    adj_lp = adj.astype(jnp.bfloat16)
    h = gin_conv(adj_lp, feats, w1, b1, eps=eps1, apply_relu=True,
                 tile_i=tile_i, tile_j=tile_j)
    return gin_conv(adj_lp, h, w2, b2, eps=eps2, apply_relu=False,
                    tile_i=tile_i, tile_j=tile_j)


def gin_reference(feats, adj, w1, b1, w2, b2, eps1=0.0, eps2=0.0):
    """Pure-JAX reference mirroring the PyTorch forward."""
    h = (1.0 + eps1) * feats + adj @ feats
    h = jnp.maximum(h @ w1 + b1, 0.0)
    h = (1.0 + eps2) * h + adj @ h
    return h @ w2 + b2


if __name__ == "__main__":
    # Small shapes; row grid of 2 so the v7x megacore gets both TensorCores busy,
    # and the reduction axis has 2 steps to exercise init/accumulate/finalize.
    N = 1024            # number of graph nodes
    in_feats = 128
    hidden_size = 128
    num_classes = 16

    key = jax.random.PRNGKey(0)
    k_feat, k_adj, k_w1, k_b1, k_w2, k_b2 = jax.random.split(key, 6)

    # Node features and a symmetric 0/1 adjacency (dense stand-in for spmm's adj).
    feats = jax.random.normal(k_feat, (N, in_feats), dtype=jnp.float32)
    adj = (jax.random.uniform(k_adj, (N, N)) > 0.9).astype(jnp.float32)
    adj = jnp.maximum(adj, adj.T)

    # nn.Linear default init U(-1/sqrt(fan_in), 1/sqrt(fan_in)); weights stored
    # as (in, out), i.e. the transpose of torch's (out, in) layout.
    bnd1 = 1.0 / math.sqrt(in_feats)
    w1 = jax.random.uniform(k_w1, (in_feats, hidden_size),
                            minval=-bnd1, maxval=bnd1, dtype=jnp.float32)
    b1 = jax.random.uniform(k_b1, (hidden_size,),
                            minval=-bnd1, maxval=bnd1, dtype=jnp.float32)
    bnd2 = 1.0 / math.sqrt(hidden_size)
    w2 = jax.random.uniform(k_w2, (hidden_size, num_classes),
                            minval=-bnd2, maxval=bnd2, dtype=jnp.float32)
    b2 = jax.random.uniform(k_b2, (num_classes,),
                            minval=-bnd2, maxval=bnd2, dtype=jnp.float32)

    out = gin_forward(feats, adj, w1, b1, w2, b2)
    out = jax.block_until_ready(out)

    ref = gin_reference(feats, adj, w1, b1, w2, b2)
    assert out.shape == (N, num_classes)
    assert jnp.allclose(out, ref, rtol=1e-3, atol=1e-3), \
        "kernel output mismatch vs reference"

    print("KERNEL_OK")
</pallas_src>

<mosaic_0001>
module attributes {stable_mosaic.version = 11 : i64} {
  func.func @linear_kernel(%arg0: i32, %arg1: memref<512x128xf32, #tpu.memory_space<vmem>>, %arg2: memref<128x128xf32, #tpu.memory_space<vmem>>, %arg3: memref<512x128xf32, #tpu.memory_space<vmem>>) attributes {dimension_semantics = [#tpu.dimension_semantics<parallel>], iteration_bounds = array<i64: 2>, scalar_prefetch = 0 : i64, scratch_operands = 0 : i64, tpu.core_type = #tpu.core_type<tc>, window_params = [{transform_indices = @transform_0, window_bounds = array<i64: 512, 128>}, {pipeline_mode = #tpu.pipeline_mode<synchronous>, transform_indices = @transform_1, window_bounds = array<i64: 128, 128>}, {transform_indices = @transform_2, window_bounds = array<i64: 512, 128>}]} {
    %c0 = arith.constant 0 : index
    %c0_0 = arith.constant 0 : index
    %0 = vector.load %arg1[%c0, %c0_0] : memref<512x128xf32, #tpu.memory_space<vmem>>, vector<512x128xf32>
    %c0_1 = arith.constant 0 : index
    %c0_2 = arith.constant 0 : index
    %1 = vector.load %arg2[%c0_1, %c0_2] : memref<128x128xf32, #tpu.memory_space<vmem>>, vector<128x128xf32>
    %cst = arith.constant dense<0.000000e+00> : vector<512x128xf32>
    %2 = tpu.matmul %0, %1, %cst {dimension_numbers = #tpu.dot_dimension_numbers<[1], [0], [0], [1], [0, 0, 1, 1], [], []>} : vector<512x128xf32>, vector<128x128xf32>, vector<512x128xf32> -> vector<512x128xf32>
    %c0_3 = arith.constant 0 : index
    %c0_4 = arith.constant 0 : index
    %3 = vector.load %arg3[%c0_3, %c0_4] : memref<512x128xf32, #tpu.memory_space<vmem>>, vector<512x128xf32>
    tpu.vector_store %arg3[%c0_3, %c0_4], %2 {strides = array<i32>} : memref<512x128xf32, #tpu.memory_space<vmem>>, vector<512x128xf32>,
    return
  }
  func.func @transform_0(%arg0: i32) -> (i32, i32) {
    %c0_i32 = arith.constant 0 : i32
    %c0_i32_0 = arith.constant 0 : i32
    return %arg0, %c0_i32 : i32, i32
  }
  func.func @transform_1(%arg0: i32) -> (i32, i32) {
    %c0_i32 = arith.constant 0 : i32
    %c0_i32_0 = arith.constant 0 : i32
    %c0_i32_1 = arith.constant 0 : i32
    return %c0_i32, %c0_i32_0 : i32, i32
  }
  func.func @transform_2(%arg0: i32) -> (i32, i32) {
    %c0_i32 = arith.constant 0 : i32
    %c0_i32_0 = arith.constant 0 : i32
    return %arg0, %c0_i32 : i32, i32
  }
}

</mosaic_0001>

<bundles_post_ra>
// kernel: tpu_custom_call.1
= control target key start
LH: loop header
LB: loop body
LE: loop exit
PB: predicated region body
PF: predicated region fallthrough
CT: control target
= control target key end

     0   :  { %7 = vsyncpa [#allocation3], 0  ;;  %s1590_s0 = inlined_call_operand.hbm [shape: f32[1024,128], index: 0, kind: input, shape index: {}]   ;;  %s1591_s1 = inlined_call_operand.hbm [shape: f32[128,128], index: 1, kind: input, shape index: {}]   ;;  %s1592_s2 = inlined_call_operand.hbm [shape: f32[1024,128], index: 2, kind: output, shape index: {}]  }
   0x1   :  { %9 = vsyncpa [#allocation3 + $0x1], 0 }
   0x2   :  { %10 = vsyncpa [#allocation6], 0 }
   0x3   :  { %11 = vsyncpa [#allocation4], 0 }
   0x4   :  { %13 = vsyncpa [#allocation4 + $0x1], 0  ;;  %s1270_s9 = smov 0   ;;  %s1272_s10 = smov 0  }
   0x5   :  { %s1274_s11 = smov 0   ;;  %s1276_s12 = smov 0  }
   0x6 LB: > { %s1291_s13 = sadd.s32 4294967295, %s1246_s12   ;;  %s805_s14 = sadd.s32 4294967294, %s1246_s12   ;;  %s1246_s12 = sphi %s1276_s12, %s1614_s12   ;;  %s1242_s11 = sphi %s1274_s11, %s1613_s11   ;;  %s1238_s10 = sphi %s1272_s10, %s1612_s10   ;;  %s1234_s9 = sphi %s1270_s9, %s1611_s9  }
   0x7   : > { %p39_p0 = scmp.ne.s32.totalorder %s1238_s10, %s1234_s9  ;;  %p1593_p1 = scmp.eq.s32.totalorder %s1291_s13, 0 }
   0x8   : > { %p90_p3 = scmp.eq.s32.totalorder %s805_s14, 1  ;;  %p806_p5 = scmp.ge.s32.totalorder %s1246_s12, 1 }
   0x9   : > { %p1300_p4 = por %p1593_p1, %p39_p0  ;;  %p97_p7 = scmp.lt.s32.totalorder %s1246_s12, 3 }
   0xa   : > { %p1305_p6 = por %p90_p3, %p39_p0  ;;  %s1248_s18 = smov [#allocation5]  }
   0xb   : > { %s1597_s15 = scalar_select %p1300_p4, 1, 0 }
   0xc   : > { %s1598_s16 = scalar_select %p1305_p6, 1, 0 }
   0xd   : > { %p1310_p8 = pnand %p806_p5, %p97_p7  ;;  %s109_s19 = sshll.u32 %s1248_s18, 4  ;;  %s110_s19 = int_to_ptr.vmem [resolvable:$true] %s109_s19 }
   0xe   : > { %s1324_s21 = sadd.s32 1, %s1246_s12   ;;  %s26_s22 = sadd.s32 1, %s1242_s11 }
   0xf   : > { %s1599_s17 = scalar_select %p1310_p8, 1, 0 }
  0x10   : > { %p1071_p9 = pneg %p1310_p8  ;;  %s23_s23 = ssub.s32 %s1246_s12, %s1324_s21 }
  0x11   : > { %s1135_s24 = scalar_lea.vmem %s110_s19, 2048  ;;  %p1143_p5 = scmp.lt.s32.totalorder %s110_s19, %s110_s19 }
  0x12   : > { %p1319_p11 = pnand %p1071_p9, %p1593_p1  ;;  %p1136_p13 = scmp.ne.s32.totalorder %s110_s19, %s1135_s24 }
  0x13   : > { %p1144_p7 = scmp.lt.s32.totalorder %s1135_s24, %s1135_s24 }
  0x14   : > { %p1126_p12 = pneg %p1319_p11 }
  0x15   : > { %p1145_p10 = por %p1144_p7, %p1143_p5 }
  0x16   : > { %p1138_p0 = pnand %p1136_p13, %p1126_p12 }
  0x18   : > { %p1139_p3 = pneg %p1138_p0 }
  0x1a   : > { %p1146_p2 = pnand %p1145_p10, %p1139_p3 }
  0x1c   : > { %1149 = shalt.err (!%p1146_p2)
}
  0x1d   : > { %s1249_s25 = smov 128   ;;  %s1250_s26 = smov 8  }
  0x1e   : > { %1074 = dma.hbm_to_vmem [thread:$0]  (!%p1319_p11), %s1591_s1, 2048, %s110_s19, [#allocation6], %s1249_s25, %s1249_s25, %s1250_s26  }
  0x1f   : > { %p24_p2 = scmp.eq.s32.totalorder %s23_s23, 0  ;;  %p33_p9 = scmp.ne.s32.totalorder %s1242_s11, %s1238_s10 }
  0x20   : > { %p34_p10 = scmp.eq.s32.totalorder %s1246_s12, 0  ;;  %p1084_p12 = scmp.lt.s32.totalorder %s1246_s12, 2 }
  0x21   : > { %s1344_s29 = scalar_select %p24_p2, %s1242_s11, %s26_s22  }
  0x22   : > { %p35_p13 = por %p34_p10, %p33_p9  ;;  %p1601_p0 = scmp.eq.s32.totalorder %s1291_s13, 1 }
  0x23   : > { %s123_s3 = sand.u32 1, %s1242_s11   ;;  %s821_s4 = sshll.u32 %s1246_s12, 13 }
  0x24   : > { %p1348_p3 = por %p1601_p0, %p33_p9  ;;  %s809_s5 = sshll.u32 %s123_s3, 9 }
  0x25   : > { %s1357_s8 = scalar_lea.hbm %s1590_s0, %s821_s4  ;;  %s127_s14 = scalar_lea.vmem [#allocation2], %s809_s5 }
  0x26   : > { %s1602_s30 = scalar_select %p1348_p3, 1, 0 }
  0x27   : > { %s134_s18 = sshll.u32 %s127_s14, 4  ;;  %p1359_p11 = pnand %p1084_p12, %p35_p13  ;;  %s1363_s18 = int_to_ptr.vmem [resolvable:$true] %s134_s18 }
  0x28   : > { %s1365_s20 = scalar_lea.sflag [#allocation3], %s123_s3  ;;  %s1150_s22 = scalar_lea.hbm %s1357_s8, 8192 }
  0x29   : > { %p1151_p5 = scmp.ne.s32.totalorder %s1357_s8, %s1150_s22  ;;  %p1152_p7 = pneg %p1359_p11 }
  0x2a   : > { %s1155_s27 = scalar_lea.hbm %s1590_s0, 16384  ;;  %p1156_p10 = scmp.lt.s32.totalorder %s1357_s8, %s1590_s0 }
  0x2b   : > { %p1153_p2 = pnand %p1152_p7, %p1151_p5  ;;  %p1157_p12 = scmp.lt.s32.totalorder %s1155_s27, %s1150_s22 }
  0x2d   : > { %p1154_p9 = pneg %p1153_p2  ;;  %p1158_p13 = por %p1157_p12, %p1156_p10 }
  0x2f   : > { %p1159_p0 = pnand %p1158_p13, %p1154_p9 }
  0x31   : > { %1162 = shalt.err (!%p1159_p0)
}
  0x32   : > { %s1163_s3 = scalar_lea.vmem %s1363_s18, 8192  ;;  %s1251_s5 = smov [#allocation2]  }
  0x33   : > { %p1164_p1 = scmp.ne.s32.totalorder %s1363_s18, %s1163_s3  ;;  %s1168_s6 = sshll.u32 %s1251_s5, 4  ;;  %s1169_s6 = int_to_ptr.vmem [resolvable:$false] %s1168_s6 }
  0x34   : > { %s1170_s7 = scalar_lea.vmem %s1169_s6, 16384  ;;  %p1171_p2 = scmp.lt.s32.totalorder %s1363_s18, %s1169_s6 }
  0x35   : > { %p1166_p6 = pnand %p1164_p1, %p1152_p7  ;;  %p1172_p3 = scmp.lt.s32.totalorder %s1170_s7, %s1163_s3 }
  0x37   : > { %p1167_p5 = pneg %p1166_p6  ;;  %p1173_p4 = por %p1172_p3, %p1171_p2 }
  0x39   : > { %p1174_p8 = pnand %p1173_p4, %p1167_p5 }
  0x3b   : > { %1177 = shalt.err (!%p1174_p8)
}
  0x3c   : > { %1078 = dma.hbm_to_vmem [thread:$0]  (!%p1359_p11), %s1357_s8, 8192, %s1363_s18, %s1365_s20, %s1249_s25, %s1249_s25, %s1250_s26  }
  0x3d   : > { %p1604_p1 = scmp.ne.s32.totalorder %s1599_s17, 0 }
  0x3e   : > { %s1392_s14 = sand.u32 (!%p1604_p1), 1, %s1238_s10   ;;  %p1605_p4 = scmp.ne.s32.totalorder (!%p1604_p1), %s1597_s15, 0 }
  0x3f   : > { %146 = sbr.rel (%p1604_p1) target bundleno = 375 (0x177), region = 28  ;;  %s813_s22 = sshll.u32 (!%p1604_p1), %s1392_s14, 9 }
  0x40   : > { %s149_s23 = scalar_lea.sflag (!%p1604_p1), [#allocation3], %s1392_s14  ;;  %s1398_s19 = scalar_lea.vmem (!%p1604_p1), [#allocation2], %s813_s22 }
  0x44   : > { %1221 = dma.done.wait (%p1605_p4), %s149_s23, 8192  }
  0x45   : > { %1223 = vsyncadd (%p1605_p4), %s149_s23, 4294959104  ;;  %p1606_p6 = scmp.eq.s32.totalorder %s1291_s13, 0 }
  0x47   : > { %1225 = dma.done.wait (%p1606_p6), [#allocation6], 2048   ;;  %p1607_p8 = pmov %p1606_p6 }
  0x48   : > { %v258_v0 = vld [vmem:[#allocation5 + $0x78] sm:$0xff]  ;;  %v257_v1 = vld [vmem:[#allocation5 + $0x70] sm:$0xff]  ;;  %v256_v2 = vld [vmem:[#allocation5 + $0x68] sm:$0xff]  ;;  %s1474_s15 = scalar_lea.vmem [#allocation7], %s813_s22  ;;  %s822_s17 = sshll.u32 %s1291_s13, 13 }
  0x49   : > { %1227 = vsyncadd (%p1607_p8), [#allocation6], 4294965248  ;;  %903 = vmatprep.subr.mxu0 %v258_v0  ;;  %1031 = vmatprep.subr.mxu1 %v258_v0  ;;  %v255_v3 = vld [vmem:[#allocation5 + $0x60] sm:$0xff]  ;;  %v254_v4 = vld [vmem:[#allocation5 + $0x58] sm:$0xff]  ;;  %s722_s25 = sshll.u32 %s1474_s15, 4  ;;  %s1541_s18 = scalar_lea.hbm %s1592_s2, %s822_s17  ;;  %s1543_s25 = int_to_ptr.vmem [resolvable:$true] %s722_s25 }
  0x4a   : > { %904 = vmatpush3.msra.mxu0 %v258_v0  ;;  %1047 = vmatpush3.msra.mxu1 %v258_v0  ;;  %v253_v5 = vld [vmem:[#allocation5 + $0x50] sm:$0xff]  ;;  %v252_v6 = vld [vmem:[#allocation5 + $0x48] sm:$0xff]  ;;  %v251_v7 = vld [vmem:[#allocation5 + $0x40] sm:$0xff]  ;;  %s709_s13 = scalar_lea.sflag [#allocation4], %s1392_s14  ;;  %s1178_s20 = scalar_lea.vmem %s1543_s25, 8192 }
  0x4b   : > { %905 = vmatprep.subr.mxu0 %v257_v1  ;;  %1032 = vmatprep.subr.mxu1 %v257_v1  ;;  %v250_v8 = vld [vmem:[#allocation5 + $0x38] sm:$0xff]  ;;  %v249_v9 = vld [vmem:[#allocation5 + $0x30] sm:$0xff]  ;;  %v248_v10 = vld [vmem:[#allocation5 + $0x28] sm:$0xff]  ;;  %p1179_p3 = scmp.ne.s32.totalorder %s1543_s25, %s1178_s20  ;;  %p1608_p11 = scmp.ne.s32.totalorder %s1602_s30, 0 }
  0x4c   : > { %906 = vmatpush3.msra.mxu0 %v257_v1  ;;  %1048 = vmatpush3.msra.mxu1 %v257_v1  ;;  %v247_v11 = vld [vmem:[#allocation5 + $0x20] sm:$0xff]  ;;  %v246_v12 = vld [vmem:[#allocation5 + $0x18] sm:$0xff]  ;;  %v245_v13 = vld [vmem:[#allocation5 + $0x10] sm:$0xff]  ;;  %s1252_s24 = smov [#allocation7]  }
  0x4d   : > { %907 = vmatprep.subr.mxu0 %v256_v2  ;;  %1033 = vmatprep.subr.mxu1 %v256_v2  ;;  %v244_v14 = vld [vmem:[#allocation5 + $0x8] sm:$0xff]  ;;  %v243_v15 = vld [vmem:[#allocation5] sm:$0xff]  ;;  %v181_v20 = vld [vmem:[%s1398_s19 + $0x10] sm:$0xff]  ;;  %p1180_p7 = pnand %p1179_p3, %p1608_p11  ;;  %s1182_s27 = sshll.u32 %s1252_s24, 4  ;;  %s1183_s27 = int_to_ptr.vmem [resolvable:$false] %s1182_s27 }
  0x4e   : > { %908 = vmatpush3.msra.mxu0 %v256_v2  ;;  %1049 = vmatpush3.msra.mxu1 %v256_v2  ;;  %v179_v16 = vld [vmem:[%s1398_s19] sm:$0xff]  ;;  %v180_v18 = vld [vmem:[%s1398_s19 + $0x8] sm:$0xff]  ;;  %v213_v21 = vld [vmem:[%s1398_s19 + $0x110] sm:$0xff]  ;;  %s1184_s28 = scalar_lea.vmem %s1183_s27, 16384  ;;  %p1185_p10 = scmp.lt.s32.totalorder %s1543_s25, %s1183_s27 }
  0x4f   : > { %909 = vmatprep.subr.mxu0 %v255_v3  ;;  %1034 = vmatprep.subr.mxu1 %v255_v3  ;;  %v211_v17 = vld [vmem:[%s1398_s19 + $0x100] sm:$0xff]  ;;  %v212_v19 = vld [vmem:[%s1398_s19 + $0x108] sm:$0xff]  ;;  %v182_v22 = vld [vmem:[%s1398_s19 + $0x18] sm:$0xff]  ;;  %p1181_p9 = pneg %p1180_p7  ;;  %p1186_p12 = scmp.lt.s32.totalorder %s1184_s28, %s1178_s20 }
  0x50   : > { %910 = vmatpush3.msra.mxu0 %v255_v3  ;;  %1050 = vmatpush3.msra.mxu1 %v255_v3  ;;  %v214_v23 = vld [vmem:[%s1398_s19 + $0x118] sm:$0xff]  ;;  %v183_v24 = vld [vmem:[%s1398_s19 + $0x20] sm:$0xff]  ;;  %v184_v26 = vld [vmem:[%s1398_s19 + $0x28] sm:$0xff] }
  0x51   : > { %911 = vmatprep.subr.mxu0 %v254_v4  ;;  %1035 = vmatprep.subr.mxu1 %v254_v4  ;;  %v215_v25 = vld [vmem:[%s1398_s19 + $0x120] sm:$0xff]  ;;  %v216_v27 = vld [vmem:[%s1398_s19 + $0x128] sm:$0xff]  ;;  %v185_v28 = vld [vmem:[%s1398_s19 + $0x30] sm:$0xff]  ;;  %p1187_p13 = por %p1186_p12, %p1185_p10 }
  0x52   : > { %912 = vmatpush3.msra.mxu0 %v254_v4  ;;  %1051 = vmatpush3.msra.mxu1 %v254_v4  ;;  %v217_v29 = vld [vmem:[%s1398_s19 + $0x130] sm:$0xff]  ;;  %v186_v30 = vld [vmem:[%s1398_s19 + $0x38] sm:$0xff]  ;;  %v187_v32 = vld [vmem:[%s1398_s19 + $0x40] sm:$0xff] }
  0x53   : > { %913 = vmatprep.subr.mxu0 %v253_v5  ;;  %1036 = vmatprep.subr.mxu1 %v253_v5  ;;  %v218_v31 = vld [vmem:[%s1398_s19 + $0x138] sm:$0xff]  ;;  %v219_v33 = vld [vmem:[%s1398_s19 + $0x140] sm:$0xff]  ;;  %v188_v34 = vld [vmem:[%s1398_s19 + $0x48] sm:$0xff]  ;;  %p1188_p0 = pnand %p1187_p13, %p1181_p9 }
  0x54   : > { %914 = vmatpush3.msra.mxu0 %v253_v5  ;;  %1052 = vmatpush3.msra.mxu1 %v253_v5  ;;  %v220_v35 = vld [vmem:[%s1398_s19 + $0x148] sm:$0xff]  ;;  %v189_v36 = vld [vmem:[%s1398_s19 + $0x50] sm:$0xff]  ;;  %v190_v38 = vld [vmem:[%s1398_s19 + $0x58] sm:$0xff] }
  0x55   : > { %915 = vmatprep.subr.mxu0 %v252_v6  ;;  %1037 = vmatprep.subr.mxu1 %v252_v6  ;;  %v221_v37 = vld [vmem:[%s1398_s19 + $0x150] sm:$0xff]  ;;  %v222_v39 = vld [vmem:[%s1398_s19 + $0x158] sm:$0xff]  ;;  %v191_v40 = vld [vmem:[%s1398_s19 + $0x60] sm:$0xff] }
  0x56   : > { %916 = vmatpush3.msra.mxu0 %v252_v6  ;;  %1053 = vmatpush3.msra.mxu1 %v252_v6  ;;  %v223_v41 = vld [vmem:[%s1398_s19 + $0x160] sm:$0xff]  ;;  %v192_v42 = vld [vmem:[%s1398_s19 + $0x68] sm:$0xff]  ;;  %v193_v44 = vld [vmem:[%s1398_s19 + $0x70] sm:$0xff] }
  0x57   : > { %917 = vmatprep.subr.mxu0 %v251_v7  ;;  %1038 = vmatprep.subr.mxu1 %v251_v7  ;;  %v224_v43 = vld [vmem:[%s1398_s19 + $0x168] sm:$0xff]  ;;  %v225_v45 = vld [vmem:[%s1398_s19 + $0x170] sm:$0xff]  ;;  %v194_v46 = vld [vmem:[%s1398_s19 + $0x78] sm:$0xff] }
  0x58   : > { %918 = vmatpush3.msra.mxu0 %v251_v7  ;;  %1054 = vmatpush3.msra.mxu1 %v251_v7  ;;  %v226_v47 = vld [vmem:[%s1398_s19 + $0x178] sm:$0xff]  ;;  %v195_v48 = vld [vmem:[%s1398_s19 + $0x80] sm:$0xff]  ;;  %v196_v50 = vld [vmem:[%s1398_s19 + $0x88] sm:$0xff] }
  0x59   : > { %919 = vmatprep.subr.mxu0 %v250_v8  ;;  %1039 = vmatprep.subr.mxu1 %v250_v8  ;;  %v227_v49 = vld [vmem:[%s1398_s19 + $0x180] sm:$0xff]  ;;  %v228_v51 = vld [vmem:[%s1398_s19 + $0x188] sm:$0xff]  ;;  %v197_v52 = vld [vmem:[%s1398_s19 + $0x90] sm:$0xff] }
  0x5a   : > { %920 = vmatpush3.msra.mxu0 %v250_v8  ;;  %1055 = vmatpush3.msra.mxu1 %v250_v8  ;;  %v229_v53 = vld [vmem:[%s1398_s19 + $0x190] sm:$0xff]  ;;  %v198_v54 = vld [vmem:[%s1398_s19 + $0x98] sm:$0xff]  ;;  %v199_v56 = vld [vmem:[%s1398_s19 + $0xa0] sm:$0xff] }
  0x5b   : > { %921 = vmatprep.subr.mxu0 %v249_v9  ;;  %1040 = vmatprep.subr.mxu1 %v249_v9  ;;  %v230_v55 = vld [vmem:[%s1398_s19 + $0x198] sm:$0xff]  ;;  %v231_v57 = vld [vmem:[%s1398_s19 + $0x1a0] sm:$0xff]  ;;  %v200_v58 = vld [vmem:[%s1398_s19 + $0xa8] sm:$0xff] }
  0x5c   : > { %922 = vmatpush3.msra.mxu0 %v249_v9  ;;  %1056 = vmatpush3.msra.mxu1 %v249_v9  ;;  %v232_v59 = vld [vmem:[%s1398_s19 + $0x1a8] sm:$0xff]  ;;  %v201_v60 = vld [vmem:[%s1398_s19 + $0xb0] sm:$0xff]  ;;  %v202_v62 = vld [vmem:[%s1398_s19 + $0xb8] sm:$0xff] }
  0x5d   : > { %923 = vmatprep.subr.mxu0 %v248_v10  ;;  %1041 = vmatprep.subr.mxu1 %v248_v10  ;;  %v233_v61 = vld [vmem:[%s1398_s19 + $0x1b0] sm:$0xff]  ;;  %v234_v63 = vld [vmem:[%s1398_s19 + $0x1b8] sm:$0xff]  ;;  %v203_v0 = vld [vmem:[%s1398_s19 + $0xc0] sm:$0xff] }
  0x5e   : > { %924 = vmatpush3.msra.mxu0 %v248_v10  ;;  %1057 = vmatpush3.msra.mxu1 %v248_v10  ;;  %v235_v1 = vld [vmem:[%s1398_s19 + $0x1c0] sm:$0xff]  ;;  %v204_v2 = vld [vmem:[%s1398_s19 + $0xc8] sm:$0xff]  ;;  %v205_v4 = vld [vmem:[%s1398_s19 + $0xd0] sm:$0xff] }
  0x5f   : > { %925 = vmatprep.subr.mxu0 %v247_v11  ;;  %1042 = vmatprep.subr.mxu1 %v247_v11  ;;  %v236_v3 = vld [vmem:[%s1398_s19 + $0x1c8] sm:$0xff]  ;;  %v237_v5 = vld [vmem:[%s1398_s19 + $0x1d0] sm:$0xff]  ;;  %v206_v6 = vld [vmem:[%s1398_s19 + $0xd8] sm:$0xff] }
  0x60   : > { %926 = vmatpush3.msra.mxu0 %v247_v11  ;;  %1058 = vmatpush3.msra.mxu1 %v247_v11  ;;  %v238_v7 = vld [vmem:[%s1398_s19 + $0x1d8] sm:$0xff]  ;;  %v207_v8 = vld [vmem:[%s1398_s19 + $0xe0] sm:$0xff]  ;;  %v208_v10 = vld [vmem:[%s1398_s19 + $0xe8] sm:$0xff] }
  0x61   : > { %927 = vmatprep.subr.mxu0 %v246_v12  ;;  %1043 = vmatprep.subr.mxu1 %v246_v12  ;;  %v239_v9 = vld [vmem:[%s1398_s19 + $0x1e0] sm:$0xff]  ;;  %v240_v11 = vld [vmem:[%s1398_s19 + $0x1e8] sm:$0xff] }
  0x62   : > { %928 = vmatpush3.msra.mxu0 %v246_v12  ;;  %1059 = vmatpush3.msra.mxu1 %v246_v12  ;;  %v209_v12 = vld [vmem:[%s1398_s19 + $0xf0] sm:$0xff] }
  0x63   : > { %929 = vmatprep.subr.mxu0 %v245_v13  ;;  %1044 = vmatprep.subr.mxu1 %v245_v13 }
  0x64   : > { %930 = vmatpush3.msra.mxu0 %v245_v13  ;;  %1060 = vmatpush3.msra.mxu1 %v245_v13  ;;  %v241_v13 = vld [vmem:[%s1398_s19 + $0x1f0] sm:$0xff] }
  0x65   : > { %931 = vmatprep.subr.mxu0 %v244_v14  ;;  %1045 = vmatprep.subr.mxu1 %v244_v14 }
  0x66   : > { %932 = vmatpush3.msra.mxu0 %v244_v14  ;;  %1061 = vmatpush3.msra.mxu1 %v244_v14  ;;  %v210_v14 = vld [vmem:[%s1398_s19 + $0xf8] sm:$0xff] }
  0x67   : > { %933 = vmatprep.subr.mxu0 %v243_v15  ;;  %1046 = vmatprep.subr.mxu1 %v243_v15 }
  0x68   : > { %934 = vmatpush3.msra.mxu0 %v243_v15  ;;  %1062 = vmatpush3.msra.mxu1 %v243_v15  ;;  %v242_v15 = vld [vmem:[%s1398_s19 + $0x1f8] sm:$0xff] }
  0x69   : > { %935 = vmatprep.mubr.f32.mxu0 %v179_v16  ;;  %983 = vmatprep.mubr.f32.mxu1 %v211_v17 }
  0x6a   : > { %936 = vmatmul.mubr.f32.vlgmr.msra.gmra.mxu0 %v180_v18  ;;  %984 = vmatmul.mubr.f32.vlgmr.msra.gmra.mxu1 %v212_v19 }
  0x6b   : > { %938 = vmatprep.mubr.f32.mxu0 %v181_v20  ;;  %986 = vmatprep.mubr.f32.mxu1 %v213_v21 }
  0x6e   : > { %939 = vmatmul.mubr.f32.gmra.mxu0 %v182_v22  ;;  %987 = vmatmul.mubr.f32.gmra.mxu1 %v214_v23 }
  0x6f   : > { %941 = vmatprep.mubr.f32.mxu0 %v183_v24  ;;  %989 = vmatprep.mubr.f32.mxu1 %v215_v25 }
  0x72   : > { %942 = vmatmul.mubr.f32.gmra.mxu0 %v184_v26  ;;  %990 = vmatmul.mubr.f32.gmra.mxu1 %v216_v27 }
  0x73   : > { %944 = vmatprep.mubr.f32.mxu0 %v185_v28  ;;  %992 = vmatprep.mubr.f32.mxu1 %v217_v29 }
  0x76   : > { %945 = vmatmul.mubr.f32.gmra.mxu0 %v186_v30  ;;  %993 = vmatmul.mubr.f32.gmra.mxu1 %v218_v31 }
  0x77   : > { %947 = vmatprep.mubr.f32.mxu0 %v187_v32  ;;  %995 = vmatprep.mubr.f32.mxu1 %v219_v33 }
  0x7a   : > { %948 = vmatmul.mubr.f32.gmra.mxu0 %v188_v34  ;;  %996 = vmatmul.mubr.f32.gmra.mxu1 %v220_v35 }
  0x7b   : > { %950 = vmatprep.mubr.f32.mxu0 %v189_v36  ;;  %998 = vmatprep.mubr.f32.mxu1 %v221_v37 }
  0x7e   : > { %951 = vmatmul.mubr.f32.gmra.mxu0 %v190_v38  ;;  %999 = vmatmul.mubr.f32.gmra.mxu1 %v222_v39 }
  0x7f   : > { %953 = vmatprep.mubr.f32.mxu0 %v191_v40  ;;  %1001 = vmatprep.mubr.f32.mxu1 %v223_v41 }
  0x82   : > { %954 = vmatmul.mubr.f32.gmra.mxu0 %v192_v42  ;;  %1002 = vmatmul.mubr.f32.gmra.mxu1 %v224_v43 }
  0x83   : > { %956 = vmatprep.mubr.f32.mxu0 %v193_v44  ;;  %1004 = vmatprep.mubr.f32.mxu1 %v225_v45 }
  0x86   : > { %957 = vmatmul.mubr.f32.gmra.mxu0 %v194_v46  ;;  %1005 = vmatmul.mubr.f32.gmra.mxu1 %v226_v47 }
  0x87   : > { %959 = vmatprep.mubr.f32.mxu0 %v195_v48  ;;  %1007 = vmatprep.mubr.f32.mxu1 %v227_v49 }
  0x8a   : > { %960 = vmatmul.mubr.f32.gmra.mxu0 %v196_v50  ;;  %1008 = vmatmul.mubr.f32.gmra.mxu1 %v228_v51 }
  0x8b   : > { %962 = vmatprep.mubr.f32.mxu0 %v197_v52  ;;  %1010 = vmatprep.mubr.f32.mxu1 %v229_v53 }
  0x8e   : > { %963 = vmatmul.mubr.f32.gmra.mxu0 %v198_v54  ;;  %1011 = vmatmul.mubr.f32.gmra.mxu1 %v230_v55 }
  0x8f   : > { %965 = vmatprep.mubr.f32.mxu0 %v199_v56  ;;  %1013 = vmatprep.mubr.f32.mxu1 %v231_v57 }
  0x92   : > { %966 = vmatmul.mubr.f32.gmra.mxu0 %v200_v58  ;;  %1014 = vmatmul.mubr.f32.gmra.mxu1 %v232_v59 }
  0x93   : > { %968 = vmatprep.mubr.f32.mxu0 %v201_v60  ;;  %1016 = vmatprep.mubr.f32.mxu1 %v233_v61 }
  0x96   : > { %969 = vmatmul.mubr.f32.gmra.mxu0 %v202_v62  ;;  %1017 = vmatmul.mubr.f32.gmra.mxu1 %v234_v63 }
  0x97   : > { %971 = vmatprep.mubr.f32.mxu0 %v203_v0  ;;  %1019 = vmatprep.mubr.f32.mxu1 %v235_v1 }
  0x9a   : > { %972 = vmatmul.mubr.f32.gmra.mxu0 %v204_v2  ;;  %1020 = vmatmul.mubr.f32.gmra.mxu1 %v236_v3 }
  0x9b   : > { %974 = vmatprep.mubr.f32.mxu0 %v205_v4  ;;  %1022 = vmatprep.mubr.f32.mxu1 %v237_v5 }
  0x9e   : > { %975 = vmatmul.mubr.f32.gmra.mxu0 %v206_v6  ;;  %1023 = vmatmul.mubr.f32.gmra.mxu1 %v238_v7 }
  0x9f   : > { %977 = vmatprep.mubr.f32.mxu0 %v207_v8  ;;  %1025 = vmatprep.mubr.f32.mxu1 %v239_v9 }
  0xa2   : > { %978 = vmatmul.mubr.f32.gmra.mxu0 %v208_v10  ;;  %1026 = vmatmul.mubr.f32.gmra.mxu1 %v240_v11 }
  0xa3   : > { %980 = vmatprep.mubr.f32.mxu0 %v209_v12  ;;  %1028 = vmatprep.mubr.f32.mxu1 %v241_v13 }
  0xa6   : > { %981 = vmatmul.mubr.f32.gmra.mxu0 %v210_v14  ;;  %1029 = vmatmul.mubr.f32.gmra.mxu1 %v242_v15 }
 0x12a   : > { %v937_v16 = vpop.f32.mrf.mxu0  ;;  %v985_v17 = vpop.f32.mrf.mxu1 }
 0x12b   : > { %645 = vst [vmem:[%s1474_s15 + $0x8] sm:$0xff] %v937_v16  ;;  %677 = vst [vmem:[%s1474_s15 + $0x108] sm:$0xff] %v985_v17 }
 0x12c   : > { %v325_v18 = vpop.f32.mrf.mxu0  ;;  %v485_v19 = vpop.f32.mrf.mxu1 }
 0x12d   : > { %644 = vst [vmem:[%s1474_s15] sm:$0xff] %v325_v18  ;;  %676 = vst [vmem:[%s1474_s15 + $0x100] sm:$0xff] %v485_v19 }
 0x12e   : > { %v940_v20 = vpop.f32.mrf.mxu0  ;;  %v988_v21 = vpop.f32.mrf.mxu1 }
 0x12f   : > { %647 = vst [vmem:[%s1474_s15 + $0x18] sm:$0xff] %v940_v20  ;;  %679 = vst [vmem:[%s1474_s15 + $0x118] sm:$0xff] %v988_v21 }
 0x130   : > { %v335_v22 = vpop.f32.mrf.mxu0  ;;  %v495_v23 = vpop.f32.mrf.mxu1 }
 0x131   : > { %646 = vst [vmem:[%s1474_s15 + $0x10] sm:$0xff] %v335_v22  ;;  %678 = vst [vmem:[%s1474_s15 + $0x110] sm:$0xff] %v495_v23 }
 0x132   : > { %v943_v24 = vpop.f32.mrf.mxu0  ;;  %v991_v25 = vpop.f32.mrf.mxu1 }
 0x133   : > { %649 = vst [vmem:[%s1474_s15 + $0x28] sm:$0xff] %v943_v24  ;;  %681 = vst [vmem:[%s1474_s15 + $0x128] sm:$0xff] %v991_v25 }
 0x134   : > { %v345_v26 = vpop.f32.mrf.mxu0  ;;  %v505_v27 = vpop.f32.mrf.mxu1 }
 0x135   : > { %648 = vst [vmem:[%s1474_s15 + $0x20] sm:$0xff] %v345_v26  ;;  %680 = vst [vmem:[%s1474_s15 + $0x120] sm:$0xff] %v505_v27 }
 0x136   : > { %v946_v28 = vpop.f32.mrf.mxu0  ;;  %v994_v29 = vpop.f32.mrf.mxu1 }
 0x137   : > { %651 = vst [vmem:[%s1474_s15 + $0x38] sm:$0xff] %v946_v28  ;;  %683 = vst [vmem:[%s1474_s15 + $0x138] sm:$0xff] %v994_v29 }
 0x138   : > { %v355_v30 = vpop.f32.mrf.mxu0  ;;  %v515_v31 = vpop.f32.mrf.mxu1 }
 0x139   : > { %650 = vst [vmem:[%s1474_s15 + $0x30] sm:$0xff] %v355_v30  ;;  %682 = vst [vmem:[%s1474_s15 + $0x130] sm:$0xff] %v515_v31 }
 0x13a   : > { %v949_v32 = vpop.f32.mrf.mxu0  ;;  %v997_v33 = vpop.f32.mrf.mxu1 }
 0x13b   : > { %653 = vst [vmem:[%s1474_s15 + $0x48] sm:$0xff] %v949_v32  ;;  %685 = vst [vmem:[%s1474_s15 + $0x148] sm:$0xff] %v997_v33 }
 0x13c   : > { %v365_v34 = vpop.f32.mrf.mxu0  ;;  %v525_v35 = vpop.f32.mrf.mxu1 }
 0x13d   : > { %652 = vst [vmem:[%s1474_s15 + $0x40] sm:$0xff] %v365_v34  ;;  %684 = vst [vmem:[%s1474_s15 + $0x140] sm:$0xff] %v525_v35 }
 0x13e   : > { %v952_v36 = vpop.f32.mrf.mxu0  ;;  %v1000_v37 = vpop.f32.mrf.mxu1 }
 0x13f   : > { %655 = vst [vmem:[%s1474_s15 + $0x58] sm:$0xff] %v952_v36  ;;  %687 = vst [vmem:[%s1474_s15 + $0x158] sm:$0xff] %v1000_v37 }
 0x140   : > { %v375_v38 = vpop.f32.mrf.mxu0  ;;  %v535_v39 = vpop.f32.mrf.mxu1 }
 0x141   : > { %654 = vst [vmem:[%s1474_s15 + $0x50] sm:$0xff] %v375_v38  ;;  %686 = vst [vmem:[%s1474_s15 + $0x150] sm:$0xff] %v535_v39 }
 0x142   : > { %v955_v40 = vpop.f32.mrf.mxu0  ;;  %v1003_v41 = vpop.f32.mrf.mxu1 }
 0x143   : > { %657 = vst [vmem:[%s1474_s15 + $0x68] sm:$0xff] %v955_v40  ;;  %689 = vst [vmem:[%s1474_s15 + $0x168] sm:$0xff] %v1003_v41 }
 0x144   : > { %v385_v42 = vpop.f32.mrf.mxu0  ;;  %v545_v43 = vpop.f32.mrf.mxu1 }
 0x145   : > { %656 = vst [vmem:[%s1474_s15 + $0x60] sm:$0xff] %v385_v42  ;;  %688 = vst [vmem:[%s1474_s15 + $0x160] sm:$0xff] %v545_v43 }
 0x146   : > { %v958_v44 = vpop.f32.mrf.mxu0  ;;  %v1006_v45 = vpop.f32.mrf.mxu1 }
 0x147   : > { %659 = vst [vmem:[%s1474_s15 + $0x78] sm:$0xff] %v958_v44  ;;  %691 = vst [vmem:[%s1474_s15 + $0x178] sm:$0xff] %v1006_v45 }
 0x148   : > { %v395_v46 = vpop.f32.mrf.mxu0  ;;  %v555_v47 = vpop.f32.mrf.mxu1 }
 0x149   : > { %658 = vst [vmem:[%s1474_s15 + $0x70] sm:$0xff] %v395_v46  ;;  %690 = vst [vmem:[%s1474_s15 + $0x170] sm:$0xff] %v555_v47 }
 0x14a   : > { %v961_v48 = vpop.f32.mrf.mxu0  ;;  %v1009_v49 = vpop.f32.mrf.mxu1 }
 0x14b   : > { %661 = vst [vmem:[%s1474_s15 + $0x88] sm:$0xff] %v961_v48  ;;  %693 = vst [vmem:[%s1474_s15 + $0x188] sm:$0xff] %v1009_v49 }
 0x14c   : > { %v405_v50 = vpop.f32.mrf.mxu0  ;;  %v565_v51 = vpop.f32.mrf.mxu1 }
 0x14d   : > { %660 = vst [vmem:[%s1474_s15 + $0x80] sm:$0xff] %v405_v50  ;;  %692 = vst [vmem:[%s1474_s15 + $0x180] sm:$0xff] %v565_v51 }
 0x14e   : > { %v964_v52 = vpop.f32.mrf.mxu0  ;;  %v1012_v53 = vpop.f32.mrf.mxu1 }
 0x14f   : > { %663 = vst [vmem:[%s1474_s15 + $0x98] sm:$0xff] %v964_v52  ;;  %695 = vst [vmem:[%s1474_s15 + $0x198] sm:$0xff] %v1012_v53 }
 0x150   : > { %v415_v54 = vpop.f32.mrf.mxu0  ;;  %v575_v55 = vpop.f32.mrf.mxu1 }
 0x151   : > { %662 = vst [vmem:[%s1474_s15 + $0x90] sm:$0xff] %v415_v54  ;;  %694 = vst [vmem:[%s1474_s15 + $0x190] sm:$0xff] %v575_v55 }
 0x152   : > { %v967_v56 = vpop.f32.mrf.mxu0  ;;  %v1015_v57 = vpop.f32.mrf.mxu1 }
 0x153   : > { %665 = vst [vmem:[%s1474_s15 + $0xa8] sm:$0xff] %v967_v56  ;;  %697 = vst [vmem:[%s1474_s15 + $0x1a8] sm:$0xff] %v1015_v57 }
 0x154   : > { %v425_v58 = vpop.f32.mrf.mxu0  ;;  %v585_v59 = vpop.f32.mrf.mxu1 }
 0x155   : > { %664 = vst [vmem:[%s1474_s15 + $0xa0] sm:$0xff] %v425_v58  ;;  %696 = vst [vmem:[%s1474_s15 + $0x1a0] sm:$0xff] %v585_v59 }
 0x156   : > { %v970_v60 = vpop.f32.mrf.mxu0  ;;  %v1018_v61 = vpop.f32.mrf.mxu1 }
 0x157   : > { %667 = vst [vmem:[%s1474_s15 + $0xb8] sm:$0xff] %v970_v60  ;;  %699 = vst [vmem:[%s1474_s15 + $0x1b8] sm:$0xff] %v1018_v61 }
 0x158   : > { %v435_v62 = vpop.f32.mrf.mxu0  ;;  %v595_v63 = vpop.f32.mrf.mxu1 }
 0x159   : > { %666 = vst [vmem:[%s1474_s15 + $0xb0] sm:$0xff] %v435_v62  ;;  %698 = vst [vmem:[%s1474_s15 + $0x1b0] sm:$0xff] %v595_v63 }
 0x15a   : > { %v973_v0 = vpop.f32.mrf.mxu0  ;;  %v1021_v1 = vpop.f32.mrf.mxu1 }
 0x15b   : > { %669 = vst [vmem:[%s1474_s15 + $0xc8] sm:$0xff] %v973_v0  ;;  %701 = vst [vmem:[%s1474_s15 + $0x1c8] sm:$0xff] %v1021_v1 }
 0x15c   : > { %v445_v2 = vpop.f32.mrf.mxu0  ;;  %v605_v3 = vpop.f32.mrf.mxu1 }
 0x15d   : > { %668 = vst [vmem:[%s1474_s15 + $0xc0] sm:$0xff] %v445_v2  ;;  %700 = vst [vmem:[%s1474_s15 + $0x1c0] sm:$0xff] %v605_v3 }
 0x15e   : > { %v976_v4 = vpop.f32.mrf.mxu0  ;;  %v1024_v5 = vpop.f32.mrf.mxu1 }
 0x15f   : > { %671 = vst [vmem:[%s1474_s15 + $0xd8] sm:$0xff] %v976_v4  ;;  %703 = vst [vmem:[%s1474_s15 + $0x1d8] sm:$0xff] %v1024_v5 }
 0x160   : > { %v455_v6 = vpop.f32.mrf.mxu0  ;;  %v615_v7 = vpop.f32.mrf.mxu1 }
 0x161   : > { %670 = vst [vmem:[%s1474_s15 + $0xd0] sm:$0xff] %v455_v6  ;;  %702 = vst [vmem:[%s1474_s15 + $0x1d0] sm:$0xff] %v615_v7 }
 0x162   : > { %v979_v8 = vpop.f32.mrf.mxu0  ;;  %v1027_v9 = vpop.f32.mrf.mxu1 }
 0x163   : > { %673 = vst [vmem:[%s1474_s15 + $0xe8] sm:$0xff] %v979_v8  ;;  %705 = vst [vmem:[%s1474_s15 + $0x1e8] sm:$0xff] %v1027_v9 }
 0x164   : > { %v465_v10 = vpop.f32.mrf.mxu0  ;;  %v625_v11 = vpop.f32.mrf.mxu1 }
 0x165   : > { %672 = vst [vmem:[%s1474_s15 + $0xe0] sm:$0xff] %v465_v10  ;;  %704 = vst [vmem:[%s1474_s15 + $0x1e0] sm:$0xff] %v625_v11 }
 0x166   : > { %v982_v12 = vpop.f32.mrf.mxu0  ;;  %v1030_v13 = vpop.f32.mrf.mxu1 }
 0x167   : > { %675 = vst [vmem:[%s1474_s15 + $0xf8] sm:$0xff] %v982_v12  ;;  %707 = vst [vmem:[%s1474_s15 + $0x1f8] sm:$0xff] %v1030_v13 }
 0x168   : > { %v475_v14 = vpop.f32.mrf.mxu0  ;;  %v635_v15 = vpop.f32.mrf.mxu1 }
 0x169   : > { %674 = vst [vmem:[%s1474_s15 + $0xf0] sm:$0xff] %v475_v14  ;;  %706 = vst [vmem:[%s1474_s15 + $0x1f0] sm:$0xff] %v635_v15 }
 0x16a   : > { %1191 = shalt.err (!%p1188_p0)
}
 0x16b   : > { %s1192_s4 = scalar_lea.hbm %s1541_s18, 8192  ;;  %s1196_s6 = scalar_lea.hbm %s1592_s2, 16384 }
 0x16c   : > { %p1193_p5 = scmp.ne.s32.totalorder %s1541_s18, %s1192_s4  ;;  %p1197_p4 = scmp.lt.s32.totalorder %s1541_s18, %s1592_s2 }
 0x16d   : > { %p1198_p6 = scmp.lt.s32.totalorder %s1196_s6, %s1192_s4 }
 0x16e   : > { %p1194_p2 = pnand %p1193_p5, %p1608_p11 }
 0x16f   : > { %p1199_p8 = por %p1198_p6, %p1197_p4 }
 0x170   : > { %p1195_p1 = pneg %p1194_p2 }
 0x172   : > { %p1200_p3 = pnand %p1199_p8, %p1195_p1 }
 0x174   : > { %1203 = shalt.err (!%p1200_p3)
}
 0x175   : > { %s1253_s23 = smov 128   ;;  %s1254_s19 = smov 8  }
 0x176   : > { %1069 = dma.vmem_to_hbm [thread:$0]  (%p1608_p11), %s1543_s25, 8192, %s1541_s18, %s709_s13, %s1253_s23, %s1253_s23, %s1254_s19  }
 0x177 PF: > { %s737_s15 = sand.u32 1, %s1234_s9   ;;  %p1609_p7 = scmp.ne.s32.totalorder %s1598_s16, 0 }
 0x178   : > { %p1610_p9 = scmp.ge.s32.totalorder %s1246_s12, 2  ;;  %s738_s17 = scalar_lea.sflag [#allocation4], %s737_s15 }
 0x17a   : > { %p1080_p10 = pnand %p1610_p9, %p1609_p7 }
 0x17c   : > { %p1081_p12 = pneg %p1080_p10 }
 0x17e   : > { %1229 = dma.done.wait (%p1081_p12), %s738_s17, 8192  }
 0x17f   : > { %1231 = vsyncadd (%p1081_p12), %s738_s17, 4294959104  ;;  %p16_p13 = scmp.ge.s32.totalorder %s1324_s21, 4   ;;  %s1611_s9 = smov %s1238_s10 }
 0x180   : > { %s1612_s10 = smov %s1242_s11  ;;  %s1613_s11 = smov %s1344_s29 }
 0x181   : > { %s1614_s12 = smov %s1324_s21  ;;  %18 = sbr.rel (!%p16_p13) target bundleno = 6 (0x6), region = 77 }
 0x186   :  { %743 = vsyncpa [#allocation3], 1 }
 0x187   :  { %745 = vsyncpa [#allocation3 + $0x1], 1 }
 0x188   :  { %746 = vsyncpa [#allocation6], 1 }
 0x189   :  { %747 = vsyncpa [#allocation4], 1 }
 0x18a   :  { %749 = vsyncpa [#allocation4 + $0x1], 1 }

</bundles_post_ra>
